<compile_context>
chip_gen: v7x
topology: tpu7x:2x2x1
jax: 0.10.0
libtpu: 0.0.40
codegen_flags: <defaults>
</compile_context>

<pallas_src>
import jax
import jax.numpy as jnp
from jax.experimental import pallas as pl
from jax.experimental.pallas import tpu as pltpu


_VMEM_BUDGET_BYTES = 24 * 1024 * 1024   # per-step working-set target
_VMEM_LIMIT_BYTES = 32 * 1024 * 1024    # scoped VMEM limit (<= physical on all gens)


def _round_up(x: int, m: int) -> int:
    return ((x + m - 1) // m) * m


def _tile_bytes(shape, itemsize: int) -> int:
    """Approximate VMEM bytes of a tile: last dim pads to 128 lanes, second-to-
    last pads to a full packed sublane group; leading dims multiply."""
    shape = tuple(int(s) for s in shape)
    if len(shape) == 1:
        shape = (1,) + shape
    *lead, rows, cols = shape
    sub = 8 * max(1, 4 // max(itemsize, 1))     # 8 for f32, 16 for bf16
    n = 1
    for d in lead:
        n *= d
    return n * _round_up(rows, sub) * _round_up(cols, 128) * itemsize


def _pick_batch_block(B: int, bytes_for, budget_bytes: int, sub: int) -> int:
    """Largest layout-legal divisor of B whose working set fits the budget.

    Candidates are the full batch or multiples of the sublane group `sub`
    (keeps the (8,128) BlockSpec rule and sublane-full output blocks).  When a
    sublane-full block still allows >= 2 grid steps we keep >= 2 so both v7x
    TensorCores get work; the ~0.35us/step overhead is negligible at that size.
    """
    cands = sorted({d for d in range(sub, B + 1, sub) if B % d == 0} | {B})
    fitting = [d for d in cands if bytes_for(d) <= budget_bytes]
    if not fitting:
        # Nothing fits the soft budget: take the smallest legal block and rely
        # on the raised vmem_limit.  (Tiling L as well would be the next step.)
        return min(cands)
    multi = [d for d in fitting if B // d >= 2 and d >= sub]
    return max(multi) if multi else max(fitting)


def _make_banded_kernel(nb: int, L: int, H: int):
    """Single lane-dense matmul: (nb, L*D) x (L*D, L*H) -> max over L -> bias/ReLU."""

    def kernel(x_ref, w_ref, b_ref, o_ref):
        # x_ref: (nb, L*D) activations; w_ref: (L*D, L*H) banded conv weights
        # (taps + boundary zeros pre-folded); b_ref: (1, H) f32; o_ref: (nb, H).
        y = jnp.dot(x_ref[...], w_ref[...],
                    preferred_element_type=jnp.float32)          # (nb, L*H) f32
        # Max-pool over L via static lane slices (avoids a (nb,L*H)->(nb,L,H)
        # relayout); L is small whenever the banded path is selected.
        pooled = y[:, 0:H]
        for l in range(1, L):
            pooled = jnp.maximum(pooled, y[:, l * H:(l + 1) * H])
        # Bias + ReLU hoisted after the max (exact: bias const over L, ReLU monotone).
        o_ref[...] = jnp.maximum(pooled + b_ref[...], 0.0)

    return kernel


def _make_general_kernel(nb: int, L: int, H: int):
    """Fused-tap matmul: (nb*L, D) x (D, 3H), tap shifts via XLU rolls + masks."""

    def kernel(x_ref, w_ref, b_ref, o_ref):
        # x_ref: (nb, L, D); w_ref: (D, 3H) = [W0 | W1 | W2]; b_ref: (1, H);
        # o_ref: (nb, H).
        D = x_ref.shape[-1]
        x2d = x_ref[...].reshape(nb * L, D)
        # One matmul for all three taps (3x the MXU columns of per-tap dots).
        y = jnp.dot(x2d, w_ref[...], preferred_element_type=jnp.float32)  # (nb*L, 3H)
        y0 = y[:, 0:H]
        y1 = y[:, H:2 * H]
        y2 = y[:, 2 * H:3 * H]
        conv = y1
        if L > 1:
            # Position within each sequence for every row of the 2-D layout.
            l_idx = jax.lax.broadcasted_iota(
                jnp.int32, (nb, L, H), 1).reshape(nb * L, H)
            # conv[l] += y0[l-1] (rows l>0) and y2[l+1] (rows l<L-1).  Sublane
            # rolls run on the XLU slot (no concatenate copies on the
            # VALU/store path); wrapped / cross-sequence rows are exactly the
            # rows zeroed by the boundary masks.
            y0s = pltpu.roll(y0, shift=1, axis=0)             # row r <- row r-1
            y2s = pltpu.roll(y2, shift=nb * L - 1, axis=0)    # row r <- row r+1
            conv = (conv
                    + jnp.where(l_idx == 0, 0.0, y0s)
                    + jnp.where(l_idx == L - 1, 0.0, y2s))
        pooled = jnp.max(conv.reshape(nb, L, H), axis=1)      # (nb, H)
        # Bias + ReLU hoisted after the max (exact).
        o_ref[...] = jnp.maximum(pooled + b_ref[...], 0.0)

    return kernel


def cnn_forward(data, conv_weight, conv_bias, *,
                compute_dtype=jnp.float32, batch_block=None, banded=None):
    """Forward pass of the CNN encoder.

    data: (B, L, D) float32, conv_weight: (H, D, 3), conv_bias: (H,).

    compute_dtype: dtype of the matmul inputs.  bf16 is valid on v5e, v6e and
    v7x (all MXUs take bf16 inputs) and halves activation HBM traffic / VMEM
    footprint for this memory-bound kernel; accumulation, bias, ReLU and the
    pooled max always stay float32.
    """
    B, L, D = data.shape
    H = conv_weight.shape[0]
    isz = jnp.dtype(compute_dtype).itemsize
    sub = 8 * max(1, 4 // isz)                 # sublane group: 8 (f32) / 16 (bf16)

    if banded is None:
        # Banded path pays L/3 extra (free) MXU zeros to get lane-dense K=L*D,
        # N=L*H tiles; only worth it when D is lane-sparse and the band is small.
        band_bytes = (L * D) * (L * H) * isz
        banded = (D < 128) and (band_bytes <= (2 << 20))

    bias2d = conv_bias.astype(jnp.float32).reshape(1, H)

    if banded:
        # ---- Banded lane-dense path ------------------------------------------------
        # band[l_in*D + d, l_out*H + h] = w[tap=l_in-l_out+1, d, h] for |l_in-l_out|<=1
        # (zero otherwise) => one matmul implements conv taps, shifts and pad.
        w_f32 = jnp.transpose(conv_weight, (2, 1, 0)).astype(jnp.float32)   # (3, D, H)
        tap = (jnp.arange(L)[:, None] - jnp.arange(L)[None, :]) + 1         # (L_in, L_out)
        valid = (tap >= 0) & (tap <= 2)
        band = jnp.where(valid[:, :, None, None], w_f32[jnp.clip(tap, 0, 2)], 0.0)
        band = jnp.transpose(band, (0, 2, 1, 3)).reshape(L * D, L * H)
        band = band.astype(compute_dtype)
        # (B, L, D) -> (B, L*D) is a free row-major merge; activations are read
        # from HBM exactly once, lane-dense.
        x = data.reshape(B, L * D).astype(compute_dtype)

        def bytes_for(nb):
            return (2 * (_tile_bytes((nb, L * D), isz)        # x block (double buffered)
                         + _tile_bytes((L * D, L * H), isz)   # banded weights
                         + _tile_bytes((nb, H), 4)            # output block
                         + _tile_bytes((1, H), 4))            # bias
                    + 2 * _tile_bytes((nb, L * H), 4))        # f32 matmul result + temps

        nb = batch_block if batch_block is not None else _pick_batch_block(
            B, bytes_for, _VMEM_BUDGET_BYTES, sub)
        assert B % nb == 0, (B, nb)
        kernel = _make_banded_kernel(nb, L, H)
        in_specs = [
            pl.BlockSpec((nb, L * D), lambda i: (i, 0)),
            pl.BlockSpec((L * D, L * H), lambda i: (0, 0)),
            pl.BlockSpec((1, H), lambda i: (0, 0)),
        ]
        operands = (x, band, bias2d)
    else:
        # ---- General fused-tap path ------------------------------------------------
        # w_cat[:, t*H:(t+1)*H] = W_t, so a single (nb*L, D) x (D, 3H) matmul
        # produces all three tap contributions.
        w_cat = jnp.transpose(conv_weight, (1, 2, 0)).reshape(D, 3 * H)
        w_cat = w_cat.astype(compute_dtype)
        x = data.astype(compute_dtype)

        def bytes_for(nb):
            return (2 * (_tile_bytes((nb, L, D), isz)         # x block (double buffered)
                         + _tile_bytes((D, 3 * H), isz)       # fused weights
                         + _tile_bytes((nb, H), 4)            # output block
                         + _tile_bytes((1, H), 4))            # bias
                    + _tile_bytes((nb * L, 3 * H), 4)         # f32 matmul result
                    + 3 * _tile_bytes((nb, L, H), 4))         # conv accum + rolled temps

        nb = batch_block if batch_block is not None else _pick_batch_block(
            B, bytes_for, _VMEM_BUDGET_BYTES, sub)
        assert B % nb == 0, (B, nb)
        kernel = _make_general_kernel(nb, L, H)
        in_specs = [
            pl.BlockSpec((nb, L, D), lambda i: (i, 0, 0)),
            pl.BlockSpec((D, 3 * H), lambda i: (0, 0)),
            pl.BlockSpec((1, H), lambda i: (0, 0)),
        ]
        operands = (x, w_cat, bias2d)

    # Output is tiny (B*H f32); keeping it as (B, H) with sublane-full blocks
    # whenever nb >= 8 is enough -- a lane-dense (B//k, k*H) re-presentation is
    # not worth the wrapper plumbing at these sizes.
    out = pl.pallas_call(
        kernel,
        out_shape=jax.ShapeDtypeStruct((B, H), jnp.float32),
        grid_spec=pltpu.PrefetchScalarGridSpec(
            num_scalar_prefetch=0,
            grid=(B // nb,),
            in_specs=in_specs,
            out_specs=pl.BlockSpec((nb, H), lambda i: (i, 0)),
        ),
        compiler_params=pltpu.CompilerParams(
            dimension_semantics=("parallel",),
            vmem_limit_bytes=_VMEM_LIMIT_BYTES,
        ),
    )(*operands)
    return out


def _reference(data, conv_weight, conv_bias):
    """Pure-JAX reference mirroring the PyTorch forward (f32)."""
    B, L, D = data.shape
    xp = jnp.pad(data, ((0, 0), (1, 1), (0, 0)))
    w = jnp.transpose(conv_weight, (2, 1, 0))  # (3, D, H)
    conv = (jnp.einsum('bld,dh->blh', xp[:, 0:L], w[0]) +
            jnp.einsum('bld,dh->blh', xp[:, 1:L + 1], w[1]) +
            jnp.einsum('bld,dh->blh', xp[:, 2:L + 2], w[2]) +
            conv_bias[None, None, :])
    return jnp.max(jnp.maximum(conv, 0.0), axis=1)


if __name__ == "__main__":
    key = jax.random.PRNGKey(0)
    k_x, k_w, k_b, k_x2, k_w2, k_b2 = jax.random.split(key, 6)

    # ---- Shapes consistent with the module: data_size D=16, hidden H=32,
    #      max_len L=8, batch B=2.  D < 128 -> banded lane-dense path. ----
    B, L, D, H = 2, 8, 16, 32
    data = jax.random.normal(k_x, (B, L, D), dtype=jnp.float32)
    # Conv1d weight shape: (out_channels, in_channels, kernel_size).
    conv_weight = jax.random.normal(k_w, (H, D, 3), dtype=jnp.float32) * 0.1
    conv_bias = jax.random.normal(k_b, (H,), dtype=jnp.float32) * 0.1
    ref = _reference(data, conv_weight, conv_bias)

    out = jax.block_until_ready(cnn_forward(data, conv_weight, conv_bias))
    assert out.shape == (B, H)
    assert jnp.allclose(out, ref, atol=1e-3, rtol=1e-3)

    # bf16 matmul-input path (valid on v5e/v6e/v7x; accumulation stays f32).
    out_bf16 = jax.block_until_ready(
        cnn_forward(data, conv_weight, conv_bias, compute_dtype=jnp.bfloat16))
    assert out_bf16.shape == (B, H)
    assert jnp.allclose(out_bf16, ref, atol=5e-2, rtol=5e-2)

    # ---- Wider embedding (D >= 128) exercises the general fused-tap path
    #      (single (D,3H) matmul + XLU rolls) and a multi-step parallel grid. ----
    B2, L2, D2, H2 = 16, 8, 256, 32
    data2 = jax.random.normal(k_x2, (B2, L2, D2), dtype=jnp.float32)
    conv_weight2 = jax.random.normal(k_w2, (H2, D2, 3), dtype=jnp.float32) * 0.1
    conv_bias2 = jax.random.normal(k_b2, (H2,), dtype=jnp.float32) * 0.1
    ref2 = _reference(data2, conv_weight2, conv_bias2)

    out2 = jax.block_until_ready(cnn_forward(data2, conv_weight2, conv_bias2))
    assert out2.shape == (B2, H2)
    assert jnp.allclose(out2, ref2, atol=1e-3, rtol=1e-3)

    print("KERNEL_OK")
</pallas_src>

<mosaic_0001>
module attributes {stable_mosaic.version = 11 : i64} {
  func.func @kernel(%arg0: i32, %arg1: memref<2x128xf32, #tpu.memory_space<vmem>>, %arg2: memref<128x256xf32, #tpu.memory_space<vmem>>, %arg3: memref<1x32xf32, #tpu.memory_space<vmem>>, %arg4: memref<2x32xf32, #tpu.memory_space<vmem>>) attributes {dimension_semantics = [#tpu.dimension_semantics<parallel>], iteration_bounds = array<i64: 1>, scalar_prefetch = 0 : i64, scratch_operands = 0 : i64, tpu.core_type = #tpu.core_type<tc>, window_params = [{transform_indices = @transform_0, window_bounds = array<i64: 2, 128>}, {pipeline_mode = #tpu.pipeline_mode<synchronous>, transform_indices = @transform_1, window_bounds = array<i64: 128, 256>}, {pipeline_mode = #tpu.pipeline_mode<synchronous>, transform_indices = @transform_2, window_bounds = array<i64: 1, 32>}, {transform_indices = @transform_3, window_bounds = array<i64: 2, 32>}]} {
    %c0 = arith.constant 0 : index
    %c0_0 = arith.constant 0 : index
    %0 = vector.load %arg1[%c0, %c0_0] : memref<2x128xf32, #tpu.memory_space<vmem>>, vector<2x128xf32>
    %c0_1 = arith.constant 0 : index
    %c0_2 = arith.constant 0 : index
    %1 = vector.load %arg2[%c0_1, %c0_2] : memref<128x256xf32, #tpu.memory_space<vmem>>, vector<128x256xf32>
    %cst = arith.constant dense<0.000000e+00> : vector<2x256xf32>
    %2 = tpu.matmul %0, %1, %cst {dimension_numbers = #tpu.dot_dimension_numbers<[1], [0], [0], [1], [0, 0, 1, 1], [], []>} : vector<2x128xf32>, vector<128x256xf32>, vector<2x256xf32> -> vector<2x256xf32>
    %3 = vector.extract_strided_slice %2 {offsets = [0, 0], sizes = [2, 32], strides = [1, 1]} : vector<2x256xf32> to vector<2x32xf32>
    %4 = vector.extract_strided_slice %2 {offsets = [0, 32], sizes = [2, 32], strides = [1, 1]} : vector<2x256xf32> to vector<2x32xf32>
    %5 = arith.maximumf %3, %4 : vector<2x32xf32>
    %6 = vector.extract_strided_slice %2 {offsets = [0, 64], sizes = [2, 32], strides = [1, 1]} : vector<2x256xf32> to vector<2x32xf32>
    %7 = arith.maximumf %5, %6 : vector<2x32xf32>
    %8 = vector.extract_strided_slice %2 {offsets = [0, 96], sizes = [2, 32], strides = [1, 1]} : vector<2x256xf32> to vector<2x32xf32>
    %9 = arith.maximumf %7, %8 : vector<2x32xf32>
    %10 = vector.extract_strided_slice %2 {offsets = [0, 128], sizes = [2, 32], strides = [1, 1]} : vector<2x256xf32> to vector<2x32xf32>
    %11 = arith.maximumf %9, %10 : vector<2x32xf32>
    %12 = vector.extract_strided_slice %2 {offsets = [0, 160], sizes = [2, 32], strides = [1, 1]} : vector<2x256xf32> to vector<2x32xf32>
    %13 = arith.maximumf %11, %12 : vector<2x32xf32>
    %14 = vector.extract_strided_slice %2 {offsets = [0, 192], sizes = [2, 32], strides = [1, 1]} : vector<2x256xf32> to vector<2x32xf32>
    %15 = arith.maximumf %13, %14 : vector<2x32xf32>
    %16 = vector.extract_strided_slice %2 {offsets = [0, 224], sizes = [2, 32], strides = [1, 1]} : vector<2x256xf32> to vector<2x32xf32>
    %17 = arith.maximumf %15, %16 : vector<2x32xf32>
    %c0_3 = arith.constant 0 : index
    %c0_4 = arith.constant 0 : index
    %18 = vector.load %arg3[%c0_3, %c0_4] : memref<1x32xf32, #tpu.memory_space<vmem>>, vector<1x32xf32>
    %19 = vector.broadcast %18 : vector<1x32xf32> to vector<2x32xf32>
    %20 = arith.addf %17, %19 : vector<2x32xf32>
    %cst_5 = arith.constant 0.000000e+00 : f32
    %21 = vector.broadcast %cst_5 : f32 to vector<2x32xf32>
    %22 = arith.maximumf %20, %21 : vector<2x32xf32>
    %c0_6 = arith.constant 0 : index
    %c0_7 = arith.constant 0 : index
    %23 = vector.load %arg4[%c0_6, %c0_7] : memref<2x32xf32, #tpu.memory_space<vmem>>, vector<2x32xf32>
    tpu.vector_store %arg4[%c0_6, %c0_7], %22 {strides = array<i32>} : memref<2x32xf32, #tpu.memory_space<vmem>>, vector<2x32xf32>,
    return
  }
  func.func @transform_0(%arg0: i32) -> (i32, i32) {
    %c0_i32 = arith.constant 0 : i32
    %c0_i32_0 = arith.constant 0 : i32
    return %arg0, %c0_i32 : i32, i32
  }
  func.func @transform_1(%arg0: i32) -> (i32, i32) {
    %c0_i32 = arith.constant 0 : i32
    %c0_i32_0 = arith.constant 0 : i32
    %c0_i32_1 = arith.constant 0 : i32
    return %c0_i32, %c0_i32_0 : i32, i32
  }
  func.func @transform_2(%arg0: i32) -> (i32, i32) {
    %c0_i32 = arith.constant 0 : i32
    %c0_i32_0 = arith.constant 0 : i32
    %c0_i32_1 = arith.constant 0 : i32
    return %c0_i32, %c0_i32_0 : i32, i32
  }
  func.func @transform_3(%arg0: i32) -> (i32, i32) {
    %c0_i32 = arith.constant 0 : i32
    %c0_i32_0 = arith.constant 0 : i32
    return %arg0, %c0_i32 : i32, i32
  }
}

</mosaic_0001>

<bundles_post_ra>
// kernel: tpu_custom_call.1
= control target key start
LH: loop header
LB: loop body
LE: loop exit
PB: predicated region body
PF: predicated region fallthrough
CT: control target
= control target key end

     0   :  { %8 = vsyncpa [#allocation3], 0  ;;  %s388_s0 = inlined_call_operand.hbm [shape: f32[2,128], index: 0, kind: input, shape index: {}]   ;;  %s389_s1 = inlined_call_operand.hbm [shape: f32[128,256], index: 1, kind: input, shape index: {}]   ;;  %s390_s2 = inlined_call_operand.vmem [shape: f32[1,32], index: 2, kind: input, shape index: {}]   ;;  %s391_s3 = inlined_call_operand.hbm [shape: f32[2,32], index: 3, kind: output, shape index: {}]  }
   0x1   :  { %9 = vsyncpa [#allocation6], 0 }
   0x2   :  { %10 = vsyncpa [#allocation4], 0  ;;  %s313_s12 = smov [#allocation2]   ;;  %s314_s14 = smov [#allocation5]  }
   0x3   :  { %s17_s13 = sshll.u32 %s313_s12, 4  ;;  %s26_s15 = sshll.u32 %s314_s14, 4  ;;  %s18_s13 = int_to_ptr.vmem [resolvable:$true] %s17_s13  ;;  %s342_s15 = int_to_ptr.vmem [resolvable:$true] %s26_s15 }
   0x4   :  { %s241_s18 = scalar_lea.hbm %s388_s0, 32 }
   0x5   :  { %p242_p0 = scmp.ne.s32.totalorder %s388_s0, %s241_s18  ;;  %p245_p1 = scmp.lt.u32.totalorder %s241_s18, %s388_s0 }
   0x7   :  { %p247_p2 = pnand %p245_p1, %p242_p0 }
   0x9   :  { %250 = shalt.err (!%p247_p2)
}
   0xa   :  { %s251_s23 = scalar_lea.vmem %s18_s13, 32  ;;  %p256_p4 = scmp.lt.s32.totalorder %s18_s13, %s18_s13 }
   0xb   :  { %p252_p3 = scmp.ne.s32.totalorder %s18_s13, %s251_s23  ;;  %p257_p5 = scmp.lt.s32.totalorder %s251_s23, %s251_s23 }
   0xd   :  { %p258_p6 = por %p257_p5, %p256_p4 }
   0xf   :  { %p259_p7 = pnand %p258_p6, %p252_p3 }
  0x11   :  { %262 = shalt.err (!%p259_p7)
}
  0x12   :  { %20 = dma.hbm_to_vmem [thread:$0]  %s388_s0, 32, %s18_s13, [#allocation3]  }
  0x13   :  { %s263_s28 = scalar_lea.hbm %s389_s1, 4096 }
  0x14   :  { %p264_p8 = scmp.ne.s32.totalorder %s389_s1, %s263_s28  ;;  %p267_p9 = scmp.lt.u32.totalorder %s263_s28, %s389_s1 }
  0x16   :  { %p269_p10 = pnand %p267_p9, %p264_p8 }
  0x18   :  { %272 = shalt.err (!%p269_p10)
}
  0x19   :  { %s273_s6 = scalar_lea.vmem %s342_s15, 4096  ;;  %p278_p12 = scmp.lt.s32.totalorder %s342_s15, %s342_s15 }
  0x1a   :  { %p274_p11 = scmp.ne.s32.totalorder %s342_s15, %s273_s6  ;;  %p279_p13 = scmp.lt.s32.totalorder %s273_s6, %s273_s6 }
  0x1c   :  { %p280_p0 = por %p279_p13, %p278_p12 }
  0x1e   :  { %p281_p1 = pnand %p280_p0, %p274_p11 }
  0x20   :  { %284 = shalt.err (!%p281_p1)
}
  0x21   :  { %s315_s0 = smov 256   ;;  %s316_s7 = smov 16  }
  0x22   :  { %32 = dma.hbm_to_vmem [thread:$0]  %s389_s1, 4096, %s342_s15, [#allocation6], %s315_s0, %s315_s0, %s316_s7  }
  0x23   :  { %307 = dma.done.wait [#allocation3], 32  }
  0x24   :  { %308 = vsyncadd [#allocation3], 4294967264 }
  0x25   :  { %309 = dma.done.wait [#allocation6], 4096  }
  0x26   :  { %310 = vsyncadd [#allocation6], 4294963200  ;;  %v317_v0 = vmov 0.0   ;;  %v43_v1 = vld [vmem:[#allocation5 + $0x8] sm:$0xff]  ;;  %v45_v2 = vld [vmem:[#allocation5 + $0x18] sm:$0xff]  ;;  %s318_s1 = smov 32  }
  0x27   :  { %138 = vmatprep.mubr.f32.mxu0 %v317_v0  ;;  %v42_v3 = vld [vmem:[#allocation5] sm:$0xff]  ;;  %v200_v4 = vpack.c.bf16 %v45_v2, %v43_v1  ;;  %v44_v5 = vld [vmem:[#allocation5 + $0x10] sm:$0xff]  ;;  %v47_v6 = vld [vmem:[#allocation5 + $0x28] sm:$0xff]  ;;  %s319_s10 = smov 96   ;;  %s320_s11 = smov 64   ;;  %vm181_vm0 = vcmask 254976  }
  0x28   :  { %v49_v7 = vld [vmem:[#allocation5 + $0x38] sm:$0xff]  ;;  %v202_v8 = vpack.c.bf16 %v44_v5, %v42_v3  ;;  %v46_v10 = vld [vmem:[#allocation5 + $0x20] sm:$0xff]  ;;  %v48_v11 = vld [vmem:[#allocation5 + $0x30] sm:$0xff]  ;;  %s321_s14 = smov [#allocation7]  }
  0x29   :  { %v204_v9 = vpack.c.bf16 %v49_v7, %v47_v6  ;;  %v51_v12 = vld [vmem:[#allocation5 + $0x48] sm:$0xff]  ;;  %201 = vmatprep.subr.bf16.mxu0 %v200_v4  ;;  %v53_v13 = vld [vmem:[#allocation5 + $0x58] sm:$0xff]  ;;  %v206_v14 = vpack.c.bf16 %v48_v11, %v46_v10  ;;  %v50_v16 = vld [vmem:[#allocation5 + $0x40] sm:$0xff]  ;;  %s189_s15 = sshll.u32 %s321_s14, 4  ;;  %s190_s15 = int_to_ptr.vmem [resolvable:$true] %s189_s15 }
  0x2a   :  { %203 = vmatpush1.bf16.msra.mxu0 %v202_v8  ;;  %v208_v15 = vpack.c.bf16 %v53_v13, %v51_v12  ;;  %v52_v17 = vld [vmem:[#allocation5 + $0x50] sm:$0xff]  ;;  %v55_v18 = vld [vmem:[#allocation5 + $0x68] sm:$0xff]  ;;  %v57_v19 = vld [vmem:[#allocation5 + $0x78] sm:$0xff]  ;;  %s285_s16 = scalar_lea.vmem %s190_s15, 32  ;;  %p290_p3 = scmp.lt.s32.totalorder %s190_s15, %s190_s15 }
  0x2b   :  { %205 = vmatprep.subr.bf16.mxu0 %v204_v9  ;;  %v210_v20 = vpack.c.bf16 %v52_v17, %v50_v16  ;;  %v212_v21 = vpack.c.bf16 %v57_v19, %v55_v18  ;;  %v54_v22 = vld [vmem:[#allocation5 + $0x60] sm:$0xff]  ;;  %v56_v23 = vld [vmem:[#allocation5 + $0x70] sm:$0xff]  ;;  %v59_v24 = vld [vmem:[#allocation5 + $0x88] sm:$0xff]  ;;  %p286_p2 = scmp.ne.s32.totalorder %s190_s15, %s285_s16  ;;  %p291_p4 = scmp.lt.s32.totalorder %s285_s16, %s285_s16 }
  0x2c   :  { %v61_v25 = vld [vmem:[#allocation5 + $0x98] sm:$0xff]  ;;  %v214_v26 = vpack.c.bf16 %v56_v23, %v54_v22  ;;  %v58_v28 = vld [vmem:[#allocation5 + $0x80] sm:$0xff]  ;;  %v60_v29 = vld [vmem:[#allocation5 + $0x90] sm:$0xff] }
  0x2d   :  { %v216_v27 = vpack.c.bf16 %v61_v25, %v59_v24  ;;  %v63_v30 = vld [vmem:[#allocation5 + $0xa8] sm:$0xff]  ;;  %v65_v31 = vld [vmem:[#allocation5 + $0xb8] sm:$0xff]  ;;  %v218_v32 = vpack.c.bf16 %v60_v29, %v58_v28  ;;  %v62_v34 = vld [vmem:[#allocation5 + $0xa0] sm:$0xff]  ;;  %p292_p5 = por %p291_p4, %p290_p3 }
  0x2e   :  { %207 = vmatpush1.bf16.msra.mxu0 %v206_v14  ;;  %v220_v33 = vpack.c.bf16 %v65_v31, %v63_v30  ;;  %v64_v35 = vld [vmem:[#allocation5 + $0xb0] sm:$0xff]  ;;  %v67_v36 = vld [vmem:[#allocation5 + $0xc8] sm:$0xff]  ;;  %v69_v37 = vld [vmem:[#allocation5 + $0xd8] sm:$0xff] }
  0x2f   :  { %209 = vmatprep.subr.bf16.mxu0 %v208_v15  ;;  %v222_v38 = vpack.c.bf16 %v64_v35, %v62_v34  ;;  %v224_v39 = vpack.c.bf16 %v69_v37, %v67_v36  ;;  %v66_v40 = vld [vmem:[#allocation5 + $0xc0] sm:$0xff]  ;;  %v68_v41 = vld [vmem:[#allocation5 + $0xd0] sm:$0xff]  ;;  %v71_v42 = vld [vmem:[#allocation5 + $0xe8] sm:$0xff]  ;;  %p293_p6 = pnand %p292_p5, %p286_p2 }
  0x30   :  { %v73_v43 = vld [vmem:[#allocation5 + $0xf8] sm:$0xff]  ;;  %v226_v44 = vpack.c.bf16 %v68_v41, %v66_v40  ;;  %v70_v46 = vld [vmem:[#allocation5 + $0xe0] sm:$0xff]  ;;  %v72_v47 = vld [vmem:[#allocation5 + $0xf0] sm:$0xff] }
  0x31   :  { %v228_v45 = vpack.c.bf16 %v73_v43, %v71_v42  ;;  %v230_v48 = vpack.c.bf16 %v72_v47, %v70_v46  ;;  %v41_v49 = vld [vmem:[#allocation2] sm:$0x3] }
  0x32   :  { %211 = vmatpush1.bf16.msra.mxu0 %v210_v20  ;;  %v199_v63 = vld [vmem:[%s390_s2] ss:$0 sm:$0xff] }
  0x33   :  { %213 = vmatprep.subr.bf16.mxu0 %v212_v21 }
  0x36   :  { %215 = vmatpush1.bf16.msra.mxu0 %v214_v26 }
  0x37   :  { %217 = vmatprep.subr.bf16.mxu0 %v216_v27 }
  0x3a   :  { %219 = vmatpush1.bf16.msra.mxu0 %v218_v32 }
  0x3b   :  { %221 = vmatprep.subr.bf16.mxu0 %v220_v33 }
  0x3e   :  { %223 = vmatpush1.bf16.msra.mxu0 %v222_v38 }
  0x3f   :  { %225 = vmatprep.subr.bf16.mxu0 %v224_v39 }
  0x42   :  { %227 = vmatpush1.bf16.msra.mxu0 %v226_v44 }
  0x43   :  { %229 = vmatprep.subr.bf16.mxu0 %v228_v45 }
  0x46   :  { %231 = vmatpush1.bf16.msra.mxu0 %v230_v48 }
  0x49   :  { %139 = vmatmul.mubr.f32.vlgmr.msra.gmra.mrb[0].mxu0 %v41_v49 }
 0x11c   :  { %v140_v50 = vpop.f32.mrb[0].mxu0 }
 0x11d   :  { %154 = vrot.lane.b32.xlu1 %v140_v50, %s318_s1  ;;  %146 = vrot.lane.b32.xlu0 %v140_v50, %s319_s10  ;;  %v142_v51 = vpop.f32.mrb[1].mxu0 }
 0x121   :  { %150 = vrot.lane.b32.xlu0 %v140_v50, %s320_s11  ;;  %160 = vrot.lane.b32.xlu1 %v142_v51, %s319_s10 }
 0x125   :  { %164 = vrot.lane.b32.xlu0 %v142_v51, %s320_s11  ;;  %168 = vrot.lane.b32.xlu1 %v142_v51, %s318_s1 }
 0x18f   :  { %v147_v52 = vpop.permute.xlu0 %146  ;;  %v155_v53 = vpop.permute.xlu1 %154 }
 0x190   :  { %v149_v54 = vmax.f32 %v140_v50, %v147_v52 }
 0x193   :  { %v151_v55 = vpop.permute.xlu0 %150  ;;  %v161_v58 = vpop.permute.xlu1 %160 }
 0x194   :  { %v153_v56 = vmax.f32 %v149_v54, %v151_v55 }
 0x196   :  { %v157_v57 = vmax.f32 %v153_v56, %v155_v53 }
 0x197   :  { %v165_v61 = vpop.permute.xlu0 %164  ;;  %v169_v0 = vpop.permute.xlu1 %168 }
 0x198   :  { %v158_v59 = vmax.f32 %v157_v57, %v142_v51 }
 0x19a   :  { %v163_v60 = vmax.f32 %v158_v59, %v161_v58 }
 0x19c   :  { %v167_v62 = vmax.f32 %v163_v60, %v165_v61 }
 0x19e   :  { %v171_v1 = vmax.f32 %v167_v62, %v169_v0 }
 0x1a0   :  { %v179_v2 = vadd.f32 %v199_v63, %v171_v1 }
 0x1a2   :  { %v180_v3 = vmax.f32 %v179_v2, 0.0 }
 0x1a4   :  { %182 = vst.msk [vmem:[#allocation7] sm:$0x3] %vm181_vm0, %v180_v3 }
 0x1a5   :  { %296 = shalt.err (!%p293_p6)
}
 0x1a6   :  { %s297_s2 = scalar_lea.hbm %s391_s3, 32 }
 0x1a7   :  { %p298_p7 = scmp.ne.s32.totalorder %s391_s3, %s297_s2  ;;  %p301_p8 = scmp.lt.u32.totalorder %s297_s2, %s391_s3 }
 0x1a9   :  { %p303_p9 = pnand %p301_p8, %p298_p7 }
 0x1ab   :  { %306 = shalt.err (!%p303_p9)
}
 0x1ac   :  { %192 = dma.vmem_to_hbm [thread:$0]  %s190_s15, 32, %s391_s3, [#allocation4]  }
 0x1ad   :  { %311 = dma.done.wait [#allocation4], 32  }
 0x1ae   :  { %312 = vsyncadd [#allocation4], 4294967264 }
 0x1af   :  { %196 = vsyncpa [#allocation3], 1 }
 0x1b0   :  { %197 = vsyncpa [#allocation6], 1 }
 0x1b1   :  { %198 = vsyncpa [#allocation4], 1 }

</bundles_post_ra>
